<compile_context>
chip_gen: v7x
topology: tpu7x:2x2x1
jax: 0.10.0
libtpu: 0.0.40
codegen_flags: <defaults>
</compile_context>

<pallas_src>
import jax
import jax.numpy as jnp
from jax.experimental import pallas as pl
from jax.experimental.pallas import tpu as pltpu

D_i = 10
D_h = 5
D_o = 2
LANE = 128                      # lane width used only for the hidden dim padding
MAX_BATCH_TILE = 8192           # rows per grid step (sweep 4096/8192/16384 at scale)
VMEM_LIMIT_BYTES = 48 * 1024 * 1024


def _round_up(n, m):
    return (n + m - 1) // m * m


def classifier_kernel(x_ref, w1_ref, b1_ref, w2_ref, b2_ref, o_ref):
    # linear1 + ReLU (single MXU pass: K=10, N=128 — no K-grid / accumulator)
    x = x_ref[...]                                                     # [tb, D_i]
    z = jnp.dot(x, w1_ref[...], preferred_element_type=jnp.float32) + b1_ref[...]
    z = jnp.maximum(z, 0.0)                                            # [tb, 128]
    # linear2 (w2 pad rows are zero -> pad lanes of z contribute nothing)
    logits = jnp.dot(z, w2_ref[...], preferred_element_type=jnp.float32) + b2_ref[...]  # [tb, D_o]
    # exact, numerically-stable softmax over the (2-wide) class axis
    m = jnp.max(logits, axis=-1, keepdims=True)
    e = jnp.exp(logits - m)
    probs = e / jnp.sum(e, axis=-1, keepdims=True)
    o_ref[...] = probs.astype(o_ref.dtype)                             # narrow [tb, D_o] store


def classifier_forward(x, w1, b1, w2, b2, *, max_batch_tile=MAX_BATCH_TILE):
    """x: [B, D_i] f32; w1: [D_i, D_h]; b1: [1, D_h]; w2: [D_h, D_o]; b2: [1, D_o]."""
    B, d_i = x.shape
    d_h = w1.shape[1]
    d_o = w2.shape[1]

    # One-time, tiny weight padding: hidden dim -> 128 lanes. x / output stay narrow.
    # Zero-fill is required for correctness of the padded hidden lanes.
    w1p = jnp.pad(w1, ((0, 0), (0, LANE - d_h)))    # [D_i, 128]
    b1p = jnp.pad(b1, ((0, 0), (0, LANE - d_h)))    # [1, 128]
    w2p = jnp.pad(w2, ((0, LANE - d_h), (0, 0)))    # [128, D_o]
    b2p = b2                                        # [1, D_o]

    # Batch tiling: big tiles amortize grid-step overhead; 8-row sublane alignment.
    tb = min(max_batch_tile, _round_up(B, 8))
    grid = (pl.cdiv(B, tb),)   # ragged tail handled by Pallas OOB masking (no host pad/slice)

    # TODO(synk): if the producer of x can emit bfloat16 directly, accept bf16 x
    # here to halve the streamed read (do NOT astype in this wrapper — that is a
    # separate full HBM pass and cancels the saving). MXU accumulation stays f32.
    # TODO(synk): if v7x profiles still show exposed DMA at tile boundaries after
    # enlarging tb, add pipeline_mode=pl.Buffered(3) to the x BlockSpec.
    def run(batch_semantics):
        return pl.pallas_call(
            classifier_kernel,
            out_shape=jax.ShapeDtypeStruct((B, d_o), jnp.float32),
            grid=grid,
            in_specs=[
                pl.BlockSpec((tb, d_i), lambda i: (i, 0)),     # x: streamed, true width
                pl.BlockSpec((d_i, LANE), lambda i: (0, 0)),   # w1: VMEM-resident
                pl.BlockSpec((1, LANE), lambda i: (0, 0)),     # b1: VMEM-resident
                pl.BlockSpec((LANE, d_o), lambda i: (0, 0)),   # w2: VMEM-resident
                pl.BlockSpec((1, d_o), lambda i: (0, 0)),      # b2: VMEM-resident
            ],
            out_specs=pl.BlockSpec((tb, d_o), lambda i: (i, 0)),   # narrow output
            compiler_params=pltpu.CompilerParams(
                dimension_semantics=(batch_semantics,),
                vmem_limit_bytes=VMEM_LIMIT_BYTES,
            ),
        )(x, w1p, b1p, w2p, b2p)

    # v7x: CORE_PARALLEL actually shards the batch grid across both TensorCores;
    # plain "parallel" is a no-op there. Fall back if the toolchain/chip rejects it
    # (single-TC v5e/v6e behave identically either way).
    try:
        return run(getattr(pltpu, "CORE_PARALLEL"))
    except Exception:
        return run("parallel")


def init_params(key):
    """Deterministic init mimicking PyTorch's nn.Linear default (U[-1/sqrt(fan_in), +])."""
    k1, k2, k3, k4 = jax.random.split(key, 4)
    bound1 = 1.0 / jnp.sqrt(D_i)
    bound2 = 1.0 / jnp.sqrt(D_h)
    # Stored already transposed to [in, out] for the kernel.
    w1 = jax.random.uniform(k1, (D_i, D_h), jnp.float32, -bound1, bound1)
    b1 = jax.random.uniform(k2, (1, D_h), jnp.float32, -bound1, bound1)
    w2 = jax.random.uniform(k3, (D_h, D_o), jnp.float32, -bound2, bound2)
    b2 = jax.random.uniform(k4, (1, D_o), jnp.float32, -bound2, bound2)
    return w1, b1, w2, b2


def reference_forward(x, w1, b1, w2, b2):
    hp = jax.lax.Precision.HIGHEST
    z = jax.nn.relu(jnp.dot(x, w1, precision=hp) + b1)
    logits = jnp.dot(z, w2, precision=hp) + b2
    return jax.nn.softmax(logits, axis=-1)


if __name__ == "__main__":
    key = jax.random.PRNGKey(0)
    kx, kp = jax.random.split(key)
    w1, b1, w2, b2 = init_params(kp)

    # Small demo batch (single grid step).
    batch = 8
    x = jax.random.normal(kx, (batch, D_i), jnp.float32)
    out = jax.block_until_ready(classifier_forward(x, w1, b1, w2, b2))
    ref = reference_forward(x, w1, b1, w2, b2)
    assert out.shape == (batch, D_o)
    # exact softmax epilogue -> tight tolerance
    assert jnp.allclose(out, ref, atol=1e-5, rtol=1e-5)
    # rows of a softmax sum to 1
    assert jnp.allclose(jnp.sum(out, axis=-1), jnp.ones((batch,)), atol=1e-6)

    # Multi-tile + ragged-tail path: batch=20 with forced 8-row tiles -> grid of 3,
    # last tile half out-of-bounds (Pallas masks its stores; no host pad/slice).
    batch2 = 20
    x2 = jax.random.normal(jax.random.PRNGKey(1), (batch2, D_i), jnp.float32)
    out2 = jax.block_until_ready(
        classifier_forward(x2, w1, b1, w2, b2, max_batch_tile=8))
    ref2 = reference_forward(x2, w1, b1, w2, b2)
    assert out2.shape == (batch2, D_o)
    assert jnp.allclose(out2, ref2, atol=1e-5, rtol=1e-5)

    print("KERNEL_OK")
</pallas_src>

<mosaic_0001>
module attributes {stable_mosaic.version = 11 : i64} {
  func.func @classifier_kernel(%arg0: i32, %arg1: memref<8x10xf32, #tpu.memory_space<vmem>>, %arg2: memref<10x128xf32, #tpu.memory_space<vmem>>, %arg3: memref<1x128xf32, #tpu.memory_space<vmem>>, %arg4: memref<128x2xf32, #tpu.memory_space<vmem>>, %arg5: memref<1x2xf32, #tpu.memory_space<vmem>>, %arg6: memref<8x2xf32, #tpu.memory_space<vmem>>) attributes {dimension_semantics = [#tpu.dimension_semantics<core_parallel>], iteration_bounds = array<i64: 1>, scalar_prefetch = 0 : i64, scratch_operands = 0 : i64, tpu.core_type = #tpu.core_type<tc>, window_params = [{transform_indices = @transform_0, window_bounds = array<i64: 8, 10>}, {pipeline_mode = #tpu.pipeline_mode<synchronous>, transform_indices = @transform_1, window_bounds = array<i64: 10, 128>}, {pipeline_mode = #tpu.pipeline_mode<synchronous>, transform_indices = @transform_2, window_bounds = array<i64: 1, 128>}, {pipeline_mode = #tpu.pipeline_mode<synchronous>, transform_indices = @transform_3, window_bounds = array<i64: 128, 2>}, {pipeline_mode = #tpu.pipeline_mode<synchronous>, transform_indices = @transform_4, window_bounds = array<i64: 1, 2>}, {transform_indices = @transform_5, window_bounds = array<i64: 8, 2>}]} {
    %c0 = arith.constant 0 : index
    %c0_0 = arith.constant 0 : index
    %0 = vector.load %arg1[%c0, %c0_0] : memref<8x10xf32, #tpu.memory_space<vmem>>, vector<8x10xf32>
    %c0_1 = arith.constant 0 : index
    %c0_2 = arith.constant 0 : index
    %1 = vector.load %arg2[%c0_1, %c0_2] : memref<10x128xf32, #tpu.memory_space<vmem>>, vector<10x128xf32>
    %cst = arith.constant dense<0.000000e+00> : vector<8x128xf32>
    %2 = tpu.matmul %0, %1, %cst {dimension_numbers = #tpu.dot_dimension_numbers<[1], [0], [0], [1], [0, 0, 1, 1], [], []>} : vector<8x10xf32>, vector<10x128xf32>, vector<8x128xf32> -> vector<8x128xf32>
    %c0_3 = arith.constant 0 : index
    %c0_4 = arith.constant 0 : index
    %3 = vector.load %arg3[%c0_3, %c0_4] : memref<1x128xf32, #tpu.memory_space<vmem>>, vector<1x128xf32>
    %4 = vector.broadcast %3 : vector<1x128xf32> to vector<8x128xf32>
    %5 = arith.addf %2, %4 : vector<8x128xf32>
    %cst_5 = arith.constant 0.000000e+00 : f32
    %6 = vector.broadcast %cst_5 : f32 to vector<8x128xf32>
    %7 = arith.maximumf %5, %6 : vector<8x128xf32>
    %c0_6 = arith.constant 0 : index
    %c0_7 = arith.constant 0 : index
    %8 = vector.load %arg4[%c0_6, %c0_7] : memref<128x2xf32, #tpu.memory_space<vmem>>, vector<128x2xf32>
    %cst_8 = arith.constant dense<0.000000e+00> : vector<8x2xf32>
    %9 = tpu.matmul %7, %8, %cst_8 {dimension_numbers = #tpu.dot_dimension_numbers<[1], [0], [0], [1], [0, 0, 1, 1], [], []>} : vector<8x128xf32>, vector<128x2xf32>, vector<8x2xf32> -> vector<8x2xf32>
    %c0_9 = arith.constant 0 : index
    %c0_10 = arith.constant 0 : index
    %10 = vector.load %arg5[%c0_9, %c0_10] : memref<1x2xf32, #tpu.memory_space<vmem>>, vector<1x2xf32>
    %11 = vector.broadcast %10 : vector<1x2xf32> to vector<8x2xf32>
    %12 = arith.addf %9, %11 : vector<8x2xf32>
    %cst_11 = arith.constant dense<0xFF800000> : vector<8xf32>
    %13 = vector.multi_reduction <maximumf>, %12, %cst_11 [1] : vector<8x2xf32> to vector<8xf32>
    %14 = vector.shape_cast %13 : vector<8xf32> to vector<8x1xf32>
    %15 = vector.broadcast %14 : vector<8x1xf32> to vector<8x2xf32>
    %16 = arith.subf %12, %15 : vector<8x2xf32>
    %17 = math.exp %16 : vector<8x2xf32>
    %cst_12 = arith.constant dense<0.000000e+00> : vector<8xf32>
    %18 = vector.multi_reduction <add>, %17, %cst_12 [1] : vector<8x2xf32> to vector<8xf32>
    %19 = vector.shape_cast %18 : vector<8xf32> to vector<8x1xf32>
    %20 = vector.broadcast %19 : vector<8x1xf32> to vector<8x2xf32>
    %21 = arith.divf %17, %20 : vector<8x2xf32>
    %c0_13 = arith.constant 0 : index
    %c0_14 = arith.constant 0 : index
    %22 = vector.load %arg6[%c0_13, %c0_14] : memref<8x2xf32, #tpu.memory_space<vmem>>, vector<8x2xf32>
    tpu.vector_store %arg6[%c0_13, %c0_14], %21 {strides = array<i32>} : memref<8x2xf32, #tpu.memory_space<vmem>>, vector<8x2xf32>,
    return
  }
  func.func @transform_0(%arg0: i32) -> (i32, i32) {
    %c0_i32 = arith.constant 0 : i32
    %c0_i32_0 = arith.constant 0 : i32
    return %arg0, %c0_i32 : i32, i32
  }
  func.func @transform_1(%arg0: i32) -> (i32, i32) {
    %c0_i32 = arith.constant 0 : i32
    %c0_i32_0 = arith.constant 0 : i32
    %c0_i32_1 = arith.constant 0 : i32
    return %c0_i32, %c0_i32_0 : i32, i32
  }
  func.func @transform_2(%arg0: i32) -> (i32, i32) {
    %c0_i32 = arith.constant 0 : i32
    %c0_i32_0 = arith.constant 0 : i32
    %c0_i32_1 = arith.constant 0 : i32
    return %c0_i32, %c0_i32_0 : i32, i32
  }
  func.func @transform_3(%arg0: i32) -> (i32, i32) {
    %c0_i32 = arith.constant 0 : i32
    %c0_i32_0 = arith.constant 0 : i32
    %c0_i32_1 = arith.constant 0 : i32
    return %c0_i32, %c0_i32_0 : i32, i32
  }
  func.func @transform_4(%arg0: i32) -> (i32, i32) {
    %c0_i32 = arith.constant 0 : i32
    %c0_i32_0 = arith.constant 0 : i32
    %c0_i32_1 = arith.constant 0 : i32
    return %c0_i32, %c0_i32_0 : i32, i32
  }
  func.func @transform_5(%arg0: i32) -> (i32, i32) {
    %c0_i32 = arith.constant 0 : i32
    %c0_i32_0 = arith.constant 0 : i32
    return %arg0, %c0_i32 : i32, i32
  }
}

module attributes {stable_mosaic.version = 11 : i64} {
  func.func @classifier_kernel(%arg0: i32, %arg1: memref<8x10xf32, #tpu.memory_space<vmem>>, %arg2: memref<10x128xf32, #tpu.memory_space<vmem>>, %arg3: memref<1x128xf32, #tpu.memory_space<vmem>>, %arg4: memref<128x2xf32, #tpu.memory_space<vmem>>, %arg5: memref<1x2xf32, #tpu.memory_space<vmem>>, %arg6: memref<8x2xf32, #tpu.memory_space<vmem>>) attributes {dimension_semantics = [#tpu.dimension_semantics<parallel>], iteration_bounds = array<i64: 1>, scalar_prefetch = 0 : i64, scratch_operands = 0 : i64, tpu.core_type = #tpu.core_type<tc>, window_params = [{transform_indices = @transform_0, window_bounds = array<i64: 8, 10>}, {pipeline_mode = #tpu.pipeline_mode<synchronous>, transform_indices = @transform_1, window_bounds = array<i64: 10, 128>}, {pipeline_mode = #tpu.pipeline_mode<synchronous>, transform_indices = @transform_2, window_bounds = array<i64: 1, 128>}, {pipeline_mode = #tpu.pipeline_mode<synchronous>, transform_indices = @transform_3, window_bounds = array<i64: 128, 2>}, {pipeline_mode = #tpu.pipeline_mode<synchronous>, transform_indices = @transform_4, window_bounds = array<i64: 1, 2>}, {transform_indices = @transform_5, window_bounds = array<i64: 8, 2>}]} {
    %c0 = arith.constant 0 : index
    %c0_0 = arith.constant 0 : index
    %0 = vector.load %arg1[%c0, %c0_0] : memref<8x10xf32, #tpu.memory_space<vmem>>, vector<8x10xf32>
    %c0_1 = arith.constant 0 : index
    %c0_2 = arith.constant 0 : index
    %1 = vector.load %arg2[%c0_1, %c0_2] : memref<10x128xf32, #tpu.memory_space<vmem>>, vector<10x128xf32>
    %cst = arith.constant dense<0.000000e+00> : vector<8x128xf32>
    %2 = tpu.matmul %0, %1, %cst {dimension_numbers = #tpu.dot_dimension_numbers<[1], [0], [0], [1], [0, 0, 1, 1], [], []>} : vector<8x10xf32>, vector<10x128xf32>, vector<8x128xf32> -> vector<8x128xf32>
    %c0_3 = arith.constant 0 : index
    %c0_4 = arith.constant 0 : index
    %3 = vector.load %arg3[%c0_3, %c0_4] : memref<1x128xf32, #tpu.memory_space<vmem>>, vector<1x128xf32>
    %4 = vector.broadcast %3 : vector<1x128xf32> to vector<8x128xf32>
    %5 = arith.addf %2, %4 : vector<8x128xf32>
    %cst_5 = arith.constant 0.000000e+00 : f32
    %6 = vector.broadcast %cst_5 : f32 to vector<8x128xf32>
    %7 = arith.maximumf %5, %6 : vector<8x128xf32>
    %c0_6 = arith.constant 0 : index
    %c0_7 = arith.constant 0 : index
    %8 = vector.load %arg4[%c0_6, %c0_7] : memref<128x2xf32, #tpu.memory_space<vmem>>, vector<128x2xf32>
    %cst_8 = arith.constant dense<0.000000e+00> : vector<8x2xf32>
    %9 = tpu.matmul %7, %8, %cst_8 {dimension_numbers = #tpu.dot_dimension_numbers<[1], [0], [0], [1], [0, 0, 1, 1], [], []>} : vector<8x128xf32>, vector<128x2xf32>, vector<8x2xf32> -> vector<8x2xf32>
    %c0_9 = arith.constant 0 : index
    %c0_10 = arith.constant 0 : index
    %10 = vector.load %arg5[%c0_9, %c0_10] : memref<1x2xf32, #tpu.memory_space<vmem>>, vector<1x2xf32>
    %11 = vector.broadcast %10 : vector<1x2xf32> to vector<8x2xf32>
    %12 = arith.addf %9, %11 : vector<8x2xf32>
    %cst_11 = arith.constant dense<0xFF800000> : vector<8xf32>
    %13 = vector.multi_reduction <maximumf>, %12, %cst_11 [1] : vector<8x2xf32> to vector<8xf32>
    %14 = vector.shape_cast %13 : vector<8xf32> to vector<8x1xf32>
    %15 = vector.broadcast %14 : vector<8x1xf32> to vector<8x2xf32>
    %16 = arith.subf %12, %15 : vector<8x2xf32>
    %17 = math.exp %16 : vector<8x2xf32>
    %cst_12 = arith.constant dense<0.000000e+00> : vector<8xf32>
    %18 = vector.multi_reduction <add>, %17, %cst_12 [1] : vector<8x2xf32> to vector<8xf32>
    %19 = vector.shape_cast %18 : vector<8xf32> to vector<8x1xf32>
    %20 = vector.broadcast %19 : vector<8x1xf32> to vector<8x2xf32>
    %21 = arith.divf %17, %20 : vector<8x2xf32>
    %c0_13 = arith.constant 0 : index
    %c0_14 = arith.constant 0 : index
    %22 = vector.load %arg6[%c0_13, %c0_14] : memref<8x2xf32, #tpu.memory_space<vmem>>, vector<8x2xf32>
    tpu.vector_store %arg6[%c0_13, %c0_14], %21 {strides = array<i32>} : memref<8x2xf32, #tpu.memory_space<vmem>>, vector<8x2xf32>,
    return
  }
  func.func @transform_0(%arg0: i32) -> (i32, i32) {
    %c0_i32 = arith.constant 0 : i32
    %c0_i32_0 = arith.constant 0 : i32
    return %arg0, %c0_i32 : i32, i32
  }
  func.func @transform_1(%arg0: i32) -> (i32, i32) {
    %c0_i32 = arith.constant 0 : i32
    %c0_i32_0 = arith.constant 0 : i32
    %c0_i32_1 = arith.constant 0 : i32
    return %c0_i32, %c0_i32_0 : i32, i32
  }
  func.func @transform_2(%arg0: i32) -> (i32, i32) {
    %c0_i32 = arith.constant 0 : i32
    %c0_i32_0 = arith.constant 0 : i32
    %c0_i32_1 = arith.constant 0 : i32
    return %c0_i32, %c0_i32_0 : i32, i32
  }
  func.func @transform_3(%arg0: i32) -> (i32, i32) {
    %c0_i32 = arith.constant 0 : i32
    %c0_i32_0 = arith.constant 0 : i32
    %c0_i32_1 = arith.constant 0 : i32
    return %c0_i32, %c0_i32_0 : i32, i32
  }
  func.func @transform_4(%arg0: i32) -> (i32, i32) {
    %c0_i32 = arith.constant 0 : i32
    %c0_i32_0 = arith.constant 0 : i32
    %c0_i32_1 = arith.constant 0 : i32
    return %c0_i32, %c0_i32_0 : i32, i32
  }
  func.func @transform_5(%arg0: i32) -> (i32, i32) {
    %c0_i32 = arith.constant 0 : i32
    %c0_i32_0 = arith.constant 0 : i32
    return %arg0, %c0_i32 : i32, i32
  }
}

</mosaic_0001>

<bundles_post_ra>
// kernel: tpu_custom_call.1
= control target key start
LH: loop header
LB: loop body
LE: loop exit
PB: predicated region body
PF: predicated region fallthrough
CT: control target
= control target key end

     0   :  { %vm54_vm0 = vcmask 1041408   ;;  %v365_v0 = vmov 0.0|0.0   ;;  %vm366_vm1 = vmmov 1   ;;  %vm367_vm3 = vmmov 0   ;;  %s468_s1 = inlined_call_operand.vmem [shape: f32[10,128], index: 1, kind: input, shape index: {}]   ;;  %s469_s3 = inlined_call_operand.vmem [shape: f32[128,2], index: 3, kind: input, shape index: {}]   ;;  %s470_s0 = inlined_call_operand.vmem [shape: f32[8,10], index: 0, kind: input, shape index: {}]   ;;  %s471_s2 = inlined_call_operand.vmem [shape: f32[1,128], index: 2, kind: input, shape index: {}]   ;;  %s472_s4 = inlined_call_operand.vmem [shape: f32[1,2], index: 4, kind: input, shape index: {}]   ;;  %s473_s5 = inlined_call_operand.vmem [shape: f32[8,2], index: 5, kind: output, shape index: {}]  }
   0x1   :  { %329 = vmatprep.subr.bf16.mxu0 %v365_v0  ;;  %v41_v1 = vld [vmem:[%s468_s1] sm:$0xff]  ;;  %v42_v2 = vld [vmem:[%s468_s1 + $0x8] sm:$0x3]  ;;  %vm331_vm2 = vmpackc.low %vm54_vm0, %vm366_vm1  ;;  %333 = vmatprep.subr.bf16.mxu1 %v365_v0  ;;  %v368_v4 = vmov 0.0   ;;  %vm50_vm4 = vcmask 80896   ;;  %vm222_vm5 = vcmask 15360  }
   0x2   :  { %v330_v3 = vpack.c.bf16 %v42_v2, %v41_v1  ;;  %291 = vmatprep.mubr.msk.f32.mxu0 %vm367_vm3, %v368_v4  ;;  %v129_v5 = vld [vmem:[%s469_s3] sm:$0xff]  ;;  %v130_v6 = vld [vmem:[%s469_s3 + $0x8] sm:$0xff]  ;;  %v131_v7 = vld [vmem:[%s469_s3 + $0x10] sm:$0xff]  ;;  %326 = vmatprep.mubr.msk.f32.mxu1 %vm367_vm3, %v368_v4 }
   0x3   :  { %v334_v8 = vpack.c.bf16 %v130_v6, %v129_v5  ;;  %v132_v9 = vld [vmem:[%s469_s3 + $0x18] sm:$0xff]  ;;  %v133_v11 = vld [vmem:[%s469_s3 + $0x20] sm:$0xff]  ;;  %v134_v12 = vld [vmem:[%s469_s3 + $0x28] sm:$0xff] }
   0x4   :  { %332 = vmatpush3.bf16.msk.msra.mxu0 %vm331_vm2, %v330_v3  ;;  %v337_v10 = vpack.c.bf16 %v132_v9, %v131_v7  ;;  %v340_v13 = vpack.c.bf16 %v134_v12, %v133_v11  ;;  %v40_v14 = vld [vmem:[%s470_s0] sm:$0xff]  ;;  %v135_v15 = vld [vmem:[%s469_s3 + $0x30] sm:$0xff]  ;;  %v136_v16 = vld [vmem:[%s469_s3 + $0x38] sm:$0xff] }
   0x5   :  { %335 = vmatpush3.bf16.msra.mxu1 %v334_v8  ;;  %v343_v17 = vpack.c.bf16 %v136_v16, %v135_v15  ;;  %v137_v18 = vld [vmem:[%s469_s3 + $0x40] sm:$0xff]  ;;  %v138_v19 = vld [vmem:[%s469_s3 + $0x48] sm:$0xff]  ;;  %v139_v21 = vld [vmem:[%s469_s3 + $0x50] sm:$0xff] }
   0x6   :  { %336 = vmatprep.subr.bf16.mxu1 %v365_v0  ;;  %v346_v20 = vpack.c.bf16 %v138_v19, %v137_v18  ;;  %v140_v22 = vld [vmem:[%s469_s3 + $0x58] sm:$0xff]  ;;  %v141_v24 = vld [vmem:[%s469_s3 + $0x60] sm:$0xff]  ;;  %v142_v25 = vld [vmem:[%s469_s3 + $0x68] sm:$0xff] }
   0x7   :  { %292 = vmatmul.mubr.msk.f32.vlgmr.msra.gmra.mrb[0].mxu0 %vm50_vm4, %v40_v14  ;;  %v349_v23 = vpack.c.bf16 %v140_v22, %v139_v21  ;;  %v352_v26 = vpack.c.bf16 %v142_v25, %v141_v24  ;;  %v143_v27 = vld [vmem:[%s469_s3 + $0x70] sm:$0xff]  ;;  %v144_v28 = vld [vmem:[%s469_s3 + $0x78] sm:$0xff]  ;;  %v263_v30 = vld [vmem:[%s471_s2] ss:$0 sm:$0xff] }
   0x8   :  { %v355_v29 = vpack.c.bf16 %v144_v28, %v143_v27  ;;  %v266_v35 = vld [vmem:[%s472_s4] ss:$0 sm:$0xff] }
   0x9   :  { %338 = vmatpush3.bf16.msra.mxu1 %v337_v10 }
   0xa   :  { %339 = vmatprep.subr.bf16.mxu1 %v365_v0 }
   0xd   :  { %341 = vmatpush3.bf16.msra.mxu1 %v340_v13 }
   0xe   :  { %342 = vmatprep.subr.bf16.mxu1 %v365_v0 }
  0x11   :  { %344 = vmatpush3.bf16.msra.mxu1 %v343_v17 }
  0x12   :  { %345 = vmatprep.subr.bf16.mxu1 %v365_v0 }
  0x15   :  { %347 = vmatpush3.bf16.msra.mxu1 %v346_v20 }
  0x16   :  { %348 = vmatprep.subr.bf16.mxu1 %v365_v0 }
  0x19   :  { %350 = vmatpush3.bf16.msra.mxu1 %v349_v23 }
  0x1a   :  { %351 = vmatprep.subr.bf16.mxu1 %v365_v0 }
  0x1d   :  { %353 = vmatpush3.bf16.msra.mxu1 %v352_v26 }
  0x1e   :  { %354 = vmatprep.subr.bf16.mxu1 %v365_v0 }
  0x21   :  { %356 = vmatpush3.bf16.msra.mxu1 %v355_v29 }
  0xda   :  { %v124_v31 = vpop.f32.mrb[0].mxu0 }
  0xdb   :  { %v125_v32 = vadd.f32 %v263_v30, %v124_v31  ;;  %v293_v33 = vpop.f32.mrb[1].mxu0 }
  0xdd   :  { %v128_v34 = vmax.f32 %v125_v32, 0.0 }
  0xdf   :  { %327 = vmatmul.mubr.f32.vlgmr.msra.gmra.mrb[0].mxu1 %v128_v34 }
 0x1b2   :  { %v218_v36 = vpop.f32.mrb[0].mxu1 }
 0x1b3   :  { %v219_v37 = vadd.f32 %v266_v35, %v218_v36  ;;  %v328_v38 = vpop.f32.mrb[1].mxu1 }
 0x1b5   :  { %v223_v39 = vsel %vm222_vm5, %v219_v37, -inf }
 0x1b6   :  { %224 = vmax.xlane.f32.xlu0 %v223_v39 }
 0x243   :  { %v225_v40 = vpop.xlane.xlu0 %224 }
 0x244   :  { %v226_v41 = vsub.f32 %v219_v37, %v225_v40 }
 0x246   :  { %v227_v42 = vmul.f32 1.442695, %v226_v41 }
 0x248   :  { %361 = vpow2.f32 %v227_v42 }
 0x252   :  { %v362_v43 = vpop.eup %361 }
 0x253   :  { %v229_v44 = vsel %vm222_vm5, %v362_v43, 0.0 }
 0x254   :  { %230 = vadd.xlane.f32.xlu0 %v229_v44 }
 0x2e1   :  { %v231_v45 = vpop.xlane.xlu0 %230 }
 0x2e2   :  { %363 = vrcp.f32 %v231_v45 }
 0x2ec   :  { %v364_v46 = vpop.eup %363 }
 0x2ed   :  { %v233_v47 = vmul.f32 %v364_v46, %v362_v43 }
 0x2ef   :  { %234 = vst.msk [vmem:[%s473_s5] sm:$0xff] %vm222_vm5, %v233_v47 }

// kernel: tpu_custom_call.1
= control target key start
LH: loop header
LB: loop body
LE: loop exit
PB: predicated region body
PF: predicated region fallthrough
CT: control target
= control target key end

     0   :  { %vm34_vm0 = vcmask 1041408   ;;  %v321_v0 = vmov 0.0|0.0   ;;  %vm322_vm1 = vmmov 1   ;;  %vm323_vm3 = vmmov 0   ;;  %s424_s1 = inlined_call_operand.vmem [shape: f32[10,128], index: 1, kind: input, shape index: {}]   ;;  %s425_s3 = inlined_call_operand.vmem [shape: f32[128,2], index: 3, kind: input, shape index: {}]   ;;  %s426_s0 = inlined_call_operand.vmem [shape: f32[8,10], index: 0, kind: input, shape index: {}]   ;;  %s427_s2 = inlined_call_operand.vmem [shape: f32[1,128], index: 2, kind: input, shape index: {}]   ;;  %s428_s4 = inlined_call_operand.vmem [shape: f32[1,2], index: 4, kind: input, shape index: {}]   ;;  %s429_s5 = inlined_call_operand.vmem [shape: f32[8,2], index: 5, kind: output, shape index: {}]  }
   0x1   :  { %285 = vmatprep.subr.bf16.mxu0 %v321_v0  ;;  %v21_v1 = vld [vmem:[%s424_s1] sm:$0xff]  ;;  %v22_v2 = vld [vmem:[%s424_s1 + $0x8] sm:$0x3]  ;;  %vm287_vm2 = vmpackc.low %vm34_vm0, %vm322_vm1  ;;  %289 = vmatprep.subr.bf16.mxu1 %v321_v0  ;;  %v324_v4 = vmov 0.0   ;;  %vm30_vm4 = vcmask 80896   ;;  %vm202_vm5 = vcmask 15360  }
   0x2   :  { %v286_v3 = vpack.c.bf16 %v22_v2, %v21_v1  ;;  %247 = vmatprep.mubr.msk.f32.mxu0 %vm323_vm3, %v324_v4  ;;  %v109_v5 = vld [vmem:[%s425_s3] sm:$0xff]  ;;  %v110_v6 = vld [vmem:[%s425_s3 + $0x8] sm:$0xff]  ;;  %282 = vmatprep.mubr.msk.f32.mxu1 %vm323_vm3, %v324_v4  ;;  %v111_v8 = vld [vmem:[%s425_s3 + $0x10] sm:$0xff] }
   0x3   :  { %v290_v7 = vpack.c.bf16 %v110_v6, %v109_v5  ;;  %v112_v9 = vld [vmem:[%s425_s3 + $0x18] sm:$0xff]  ;;  %v20_v10 = vld [vmem:[%s426_s0] sm:$0xff]  ;;  %v114_v13 = vld [vmem:[%s425_s3 + $0x28] sm:$0xff] }
   0x4   :  { %288 = vmatpush3.bf16.msk.msra.mxu0 %vm287_vm2, %v286_v3  ;;  %v293_v11 = vpack.c.bf16 %v112_v9, %v111_v8  ;;  %v113_v12 = vld [vmem:[%s425_s3 + $0x20] sm:$0xff]  ;;  %v115_v15 = vld [vmem:[%s425_s3 + $0x30] sm:$0xff]  ;;  %v116_v16 = vld [vmem:[%s425_s3 + $0x38] sm:$0xff] }
   0x5   :  { %291 = vmatpush3.bf16.msra.mxu1 %v290_v7  ;;  %v296_v14 = vpack.c.bf16 %v114_v13, %v113_v12  ;;  %v299_v17 = vpack.c.bf16 %v116_v16, %v115_v15  ;;  %v117_v18 = vld [vmem:[%s425_s3 + $0x40] sm:$0xff]  ;;  %v118_v19 = vld [vmem:[%s425_s3 + $0x48] sm:$0xff]  ;;  %v119_v21 = vld [vmem:[%s425_s3 + $0x50] sm:$0xff] }
   0x6   :  { %292 = vmatprep.subr.bf16.mxu1 %v321_v0  ;;  %v302_v20 = vpack.c.bf16 %v118_v19, %v117_v18  ;;  %v120_v22 = vld [vmem:[%s425_s3 + $0x58] sm:$0xff]  ;;  %v121_v24 = vld [vmem:[%s425_s3 + $0x60] sm:$0xff]  ;;  %v122_v25 = vld [vmem:[%s425_s3 + $0x68] sm:$0xff] }
   0x7   :  { %248 = vmatmul.mubr.msk.f32.vlgmr.msra.gmra.mrb[0].mxu0 %vm30_vm4, %v20_v10  ;;  %v305_v23 = vpack.c.bf16 %v120_v22, %v119_v21  ;;  %v308_v26 = vpack.c.bf16 %v122_v25, %v121_v24  ;;  %v123_v27 = vld [vmem:[%s425_s3 + $0x70] sm:$0xff]  ;;  %v124_v28 = vld [vmem:[%s425_s3 + $0x78] sm:$0xff]  ;;  %v219_v30 = vld [vmem:[%s427_s2] ss:$0 sm:$0xff] }
   0x8   :  { %v311_v29 = vpack.c.bf16 %v124_v28, %v123_v27  ;;  %v222_v35 = vld [vmem:[%s428_s4] ss:$0 sm:$0xff] }
   0x9   :  { %294 = vmatpush3.bf16.msra.mxu1 %v293_v11 }
   0xa   :  { %295 = vmatprep.subr.bf16.mxu1 %v321_v0 }
   0xd   :  { %297 = vmatpush3.bf16.msra.mxu1 %v296_v14 }
   0xe   :  { %298 = vmatprep.subr.bf16.mxu1 %v321_v0 }
  0x11   :  { %300 = vmatpush3.bf16.msra.mxu1 %v299_v17 }
  0x12   :  { %301 = vmatprep.subr.bf16.mxu1 %v321_v0 }
  0x15   :  { %303 = vmatpush3.bf16.msra.mxu1 %v302_v20 }
  0x16   :  { %304 = vmatprep.subr.bf16.mxu1 %v321_v0 }
  0x19   :  { %306 = vmatpush3.bf16.msra.mxu1 %v305_v23 }
  0x1a   :  { %307 = vmatprep.subr.bf16.mxu1 %v321_v0 }
  0x1d   :  { %309 = vmatpush3.bf16.msra.mxu1 %v308_v26 }
  0x1e   :  { %310 = vmatprep.subr.bf16.mxu1 %v321_v0 }
  0x21   :  { %312 = vmatpush3.bf16.msra.mxu1 %v311_v29 }
  0xda   :  { %v104_v31 = vpop.f32.mrb[0].mxu0 }
  0xdb   :  { %v105_v32 = vadd.f32 %v219_v30, %v104_v31  ;;  %v249_v33 = vpop.f32.mrb[1].mxu0 }
  0xdd   :  { %v108_v34 = vmax.f32 %v105_v32, 0.0 }
  0xdf   :  { %283 = vmatmul.mubr.f32.vlgmr.msra.gmra.mrb[0].mxu1 %v108_v34 }
 0x1b2   :  { %v198_v36 = vpop.f32.mrb[0].mxu1 }
 0x1b3   :  { %v199_v37 = vadd.f32 %v222_v35, %v198_v36  ;;  %v284_v38 = vpop.f32.mrb[1].mxu1 }
 0x1b5   :  { %v203_v39 = vsel %vm202_vm5, %v199_v37, -inf }
 0x1b6   :  { %204 = vmax.xlane.f32.xlu0 %v203_v39 }
 0x243   :  { %v205_v40 = vpop.xlane.xlu0 %204 }
 0x244   :  { %v206_v41 = vsub.f32 %v199_v37, %v205_v40 }
 0x246   :  { %v207_v42 = vmul.f32 1.442695, %v206_v41 }
 0x248   :  { %317 = vpow2.f32 %v207_v42 }
 0x252   :  { %v318_v43 = vpop.eup %317 }
 0x253   :  { %v209_v44 = vsel %vm202_vm5, %v318_v43, 0.0 }
 0x254   :  { %210 = vadd.xlane.f32.xlu0 %v209_v44 }
 0x2e1   :  { %v211_v45 = vpop.xlane.xlu0 %210 }
 0x2e2   :  { %319 = vrcp.f32 %v211_v45 }
 0x2ec   :  { %v320_v46 = vpop.eup %319 }
 0x2ed   :  { %v213_v47 = vmul.f32 %v320_v46, %v318_v43 }
 0x2ef   :  { %214 = vst.msk [vmem:[%s429_s5] sm:$0xff] %vm202_vm5, %v213_v47 }

</bundles_post_ra>
